<compile_context>
chip_gen: v7x
topology: tpu7x:2x2x1
jax: 0.10.0
libtpu: 0.0.40
codegen_flags: <defaults>
</compile_context>

<pallas_src>
import functools

import jax
import jax.numpy as jnp
from jax.experimental import pallas as pl
from jax.experimental.pallas import tpu as pltpu


def _p2vl_kernel(w_idx_ref, c_idx_ref,   # scalar-prefetch (SMEM), (B_padded,) int32
                 w_hbm, c_hbm,           # embedding tables in HBM (pl.ANY), (vocab, dim)
                 out_ref,                # (TB, 3) VMEM block of the (B_padded, 3) output
                 w_buf, c_buf,           # VMEM scratch, (TB, dim)
                 sem,                    # DMA semaphores, shape (2,)
                 *, tb):
    b = pl.program_id(0)
    base = b * tb

    # ---- issue all 2*TB row gathers back-to-back (all in flight together) ----
    @pl.loop(0, tb)
    def _issue(i):
        wi = w_idx_ref[base + i]
        ci = c_idx_ref[base + i]
        pltpu.make_async_copy(w_hbm.at[pl.ds(wi, 1)],
                              w_buf.at[pl.ds(i, 1)], sem.at[0]).start()
        pltpu.make_async_copy(c_hbm.at[pl.ds(ci, 1)],
                              c_buf.at[pl.ds(i, 1)], sem.at[1]).start()

    # ---- wait for completion (all row copies have identical size) ----
    @pl.loop(0, tb)
    def _wait(i):
        pltpu.make_async_copy(w_hbm.at[pl.ds(0, 1)],
                              w_buf.at[pl.ds(0, 1)], sem.at[0]).wait()
        pltpu.make_async_copy(c_hbm.at[pl.ds(0, 1)],
                              c_buf.at[pl.ds(0, 1)], sem.at[1]).wait()

    w = w_buf[...]
    c = c_buf[...]
    if w.dtype != jnp.float32:   # bf16 tables: upcast once, accumulate in f32
        w = w.astype(jnp.float32)
        c = c.astype(jnp.float32)

    # Vectorized per-row reductions over `dim` (lane axis) for the whole tile.
    score = jnp.sum(w * c, axis=1, keepdims=True)             # (TB, 1)
    nrm_w = jnp.sqrt(jnp.sum(w * w, axis=1, keepdims=True))   # (TB, 1)
    nrm_c = jnp.sqrt(jnp.sum(c * c, axis=1, keepdims=True))   # (TB, 1)

    # Packed output: one (TB, 3) block -> a single output DMA per grid step.
    out_ref[:, 0:1] = score
    out_ref[:, 1:2] = nrm_w
    out_ref[:, 2:3] = nrm_c


@functools.partial(jax.jit, static_argnames=("tb",))
def p2vl_forward(W, C, w_idx, c_idx, *, tb=128):
    """Pallas implementation of P2VL.forward. Returns (score, score_w, score_c)."""
    assert W.shape == C.shape and W.dtype == C.dtype
    vocab, dim = W.shape
    B = w_idx.shape[0]

    nb = pl.cdiv(B, tb)
    b_padded = nb * tb
    pad = b_padded - B
    # Pad with index 0 (the padding row); padded rows are sliced off below.
    w_idx_p = jnp.pad(w_idx.astype(jnp.int32), (0, pad))
    c_idx_p = jnp.pad(c_idx.astype(jnp.int32), (0, pad))

    grid_spec = pltpu.PrefetchScalarGridSpec(
        num_scalar_prefetch=2,          # w_idx, c_idx live in SMEM for the DMA loop
        grid=(nb,),
        in_specs=[
            pl.BlockSpec(memory_space=pl.ANY),   # W stays in HBM, gathered via DMA
            pl.BlockSpec(memory_space=pl.ANY),   # C stays in HBM, gathered via DMA
        ],
        out_specs=pl.BlockSpec((tb, 3), lambda b, *_: (b, 0)),
        scratch_shapes=[
            pltpu.VMEM((tb, dim), W.dtype),
            pltpu.VMEM((tb, dim), C.dtype),
            pltpu.SemaphoreType.DMA((2,)),
        ],
    )

    packed = pl.pallas_call(
        functools.partial(_p2vl_kernel, tb=tb),
        out_shape=jax.ShapeDtypeStruct((b_padded, 3), jnp.float32),
        grid_spec=grid_spec,
        compiler_params=pltpu.CompilerParams(
            dimension_semantics=("parallel",),   # batch blocks are independent
        ),
    )(w_idx_p, c_idx_p, W, C)

    return packed[:B, 0], packed[:B, 1], packed[:B, 2]


if __name__ == "__main__":
    # Deterministic synthetic parameters (nn.Embedding init ~ N(0,1); padding row 0
    # zeroed by the caller, matching padding_idx=0 behaviour).
    vocab, dim, B = 512, 128, 200
    key = jax.random.PRNGKey(0)
    k_w, k_c, k_wi, k_ci = jax.random.split(key, 4)

    W = jax.random.normal(k_w, (vocab, dim), dtype=jnp.float32)
    C = jax.random.normal(k_c, (vocab, dim), dtype=jnp.float32)
    W = W.at[0].set(0.0)   # padding_idx=0
    C = C.at[0].set(0.0)   # padding_idx=0

    w_idx = jax.random.randint(k_wi, (B,), 0, vocab, dtype=jnp.int32)
    c_idx = jax.random.randint(k_ci, (B,), 0, vocab, dtype=jnp.int32)

    score, score_w, score_c = p2vl_forward(W, C, w_idx, c_idx)
    jax.block_until_ready((score, score_w, score_c))

    # Reference check in plain JAX (same math as the PyTorch forward).
    wb = W[w_idx]
    cb = C[c_idx]
    ref_s = jnp.sum(wb * cb, axis=1)
    ref_w = jnp.sqrt(jnp.sum(wb * wb, axis=1))
    ref_c = jnp.sqrt(jnp.sum(cb * cb, axis=1))

    assert jnp.allclose(score, ref_s, atol=1e-3, rtol=1e-3)
    assert jnp.allclose(score_w, ref_w, atol=1e-3, rtol=1e-3)
    assert jnp.allclose(score_c, ref_c, atol=1e-3, rtol=1e-3)

    print("KERNEL_OK")
</pallas_src>

<mosaic_0001>
module attributes {stable_mosaic.version = 11 : i64} {
  func.func @_p2vl_kernel(%arg0: i32, %arg1: memref<256xi32, #tpu.memory_space<smem>>, %arg2: memref<256xi32, #tpu.memory_space<smem>>, %arg3: memref<512x128xf32, #tpu.memory_space<any>>, %arg4: memref<512x128xf32, #tpu.memory_space<any>>, %arg5: memref<128x3xf32, #tpu.memory_space<vmem>>, %arg6: memref<128x128xf32, #tpu.memory_space<vmem>>, %arg7: memref<128x128xf32, #tpu.memory_space<vmem>>, %arg8: memref<2x!tpu.dma_semaphore, #tpu.memory_space<semaphore_mem>>) attributes {dimension_semantics = [#tpu.dimension_semantics<parallel>], iteration_bounds = array<i64: 2>, scalar_prefetch = 2 : i64, scratch_operands = 3 : i64, tpu.core_type = #tpu.core_type<tc>, window_params = [{}, {}, {transform_indices = @transform_2, window_bounds = array<i64: 128, 3>}]} {
    %c128_i32 = arith.constant 128 : i32
    %0 = arith.muli %arg0, %c128_i32 : i32
    %c0_i32 = arith.constant 0 : i32
    %c128_i32_0 = arith.constant 128 : i32
    %1 = arith.addi %c0_i32, %c128_i32_0 : i32
    %c1_i32 = arith.constant 1 : i32
    scf.for %arg9 = %c0_i32 to %1 step %c1_i32  : i32 {
      %c1_i32_14 = arith.constant 1 : i32
      %19 = arith.muli %arg9, %c1_i32_14 : i32
      %c0_i32_15 = arith.constant 0 : i32
      %20 = arith.addi %c0_i32_15, %19 : i32
      %21 = arith.addi %0, %20 : i32
      %22 = arith.index_cast %21 : i32 to index
      %23 = memref.load %arg1[%22] : memref<256xi32, #tpu.memory_space<smem>>
      %24 = arith.addi %0, %20 : i32
      %25 = arith.index_cast %24 : i32 to index
      %26 = memref.load %arg2[%25] : memref<256xi32, #tpu.memory_space<smem>>
      %c0_i32_16 = arith.constant 0 : i32
      %c0_i32_17 = arith.constant 0 : i32
      %27 = tpu.memref_slice %arg3[%23, %c0_i32_17] : memref<512x128xf32, #tpu.memory_space<any>> -> memref<1x128xf32, #tpu.memory_space<any>>
      %c0_i32_18 = arith.constant 0 : i32
      %28 = tpu.memref_slice %arg6[%20, %c0_i32_18] : memref<128x128xf32, #tpu.memory_space<vmem>> -> memref<1x128xf32, #tpu.memory_space<vmem>>
      %29 = tpu.memref_slice %arg8[%c0_i32_16] : memref<2x!tpu.dma_semaphore, #tpu.memory_space<semaphore_mem>> -> memref<1x!tpu.dma_semaphore, #tpu.memory_space<semaphore_mem>>
      %30 = tpu.memref_squeeze %29 : memref<1x!tpu.dma_semaphore, #tpu.memory_space<semaphore_mem>> -> memref<!tpu.dma_semaphore, #tpu.memory_space<semaphore_mem>>
      tpu.enqueue_dma source(%27 : memref<1x128xf32, #tpu.memory_space<any>>) target(%28 : memref<1x128xf32, #tpu.memory_space<vmem>>) target_semaphore(%30 : memref<!tpu.dma_semaphore, #tpu.memory_space<semaphore_mem>>)
      %c1_i32_19 = arith.constant 1 : i32
      %c0_i32_20 = arith.constant 0 : i32
      %31 = tpu.memref_slice %arg4[%26, %c0_i32_20] : memref<512x128xf32, #tpu.memory_space<any>> -> memref<1x128xf32, #tpu.memory_space<any>>
      %c0_i32_21 = arith.constant 0 : i32
      %32 = tpu.memref_slice %arg7[%20, %c0_i32_21] : memref<128x128xf32, #tpu.memory_space<vmem>> -> memref<1x128xf32, #tpu.memory_space<vmem>>
      %33 = tpu.memref_slice %arg8[%c1_i32_19] : memref<2x!tpu.dma_semaphore, #tpu.memory_space<semaphore_mem>> -> memref<1x!tpu.dma_semaphore, #tpu.memory_space<semaphore_mem>>
      %34 = tpu.memref_squeeze %33 : memref<1x!tpu.dma_semaphore, #tpu.memory_space<semaphore_mem>> -> memref<!tpu.dma_semaphore, #tpu.memory_space<semaphore_mem>>
      tpu.enqueue_dma source(%31 : memref<1x128xf32, #tpu.memory_space<any>>) target(%32 : memref<1x128xf32, #tpu.memory_space<vmem>>) target_semaphore(%34 : memref<!tpu.dma_semaphore, #tpu.memory_space<semaphore_mem>>)
    }
    %c128_i32_1 = arith.constant 128 : i32
    %c0_i32_2 = arith.constant 0 : i32
    %c128_i32_3 = arith.constant 128 : i32
    %2 = arith.addi %c0_i32_2, %c128_i32_3 : i32
    %c1_i32_4 = arith.constant 1 : i32
    scf.for %arg9 = %c0_i32_2 to %2 step %c1_i32_4  : i32 {
      %c0_i32_14 = arith.constant 0 : i32
      %c0_i32_15 = arith.constant 0 : i32
      %c0_i32_16 = arith.constant 0 : i32
      %19 = tpu.memref_slice %arg3[%c0_i32_15, %c0_i32_16] : memref<512x128xf32, #tpu.memory_space<any>> -> memref<1x128xf32, #tpu.memory_space<any>>
      %c0_i32_17 = arith.constant 0 : i32
      %c0_i32_18 = arith.constant 0 : i32
      %20 = tpu.memref_slice %arg6[%c0_i32_17, %c0_i32_18] : memref<128x128xf32, #tpu.memory_space<vmem>> -> memref<1x128xf32, #tpu.memory_space<vmem>>
      %21 = tpu.memref_slice %arg8[%c0_i32_14] : memref<2x!tpu.dma_semaphore, #tpu.memory_space<semaphore_mem>> -> memref<1x!tpu.dma_semaphore, #tpu.memory_space<semaphore_mem>>
      %22 = tpu.memref_squeeze %21 : memref<1x!tpu.dma_semaphore, #tpu.memory_space<semaphore_mem>> -> memref<!tpu.dma_semaphore, #tpu.memory_space<semaphore_mem>>
      tpu.wait_dma2 semaphore(%22 : memref<!tpu.dma_semaphore, #tpu.memory_space<semaphore_mem>>) src(%19 : memref<1x128xf32, #tpu.memory_space<any>>) dst(%20 : memref<1x128xf32, #tpu.memory_space<vmem>>)
      %c1_i32_19 = arith.constant 1 : i32
      %c0_i32_20 = arith.constant 0 : i32
      %c0_i32_21 = arith.constant 0 : i32
      %23 = tpu.memref_slice %arg4[%c0_i32_20, %c0_i32_21] : memref<512x128xf32, #tpu.memory_space<any>> -> memref<1x128xf32, #tpu.memory_space<any>>
      %c0_i32_22 = arith.constant 0 : i32
      %c0_i32_23 = arith.constant 0 : i32
      %24 = tpu.memref_slice %arg7[%c0_i32_22, %c0_i32_23] : memref<128x128xf32, #tpu.memory_space<vmem>> -> memref<1x128xf32, #tpu.memory_space<vmem>>
      %25 = tpu.memref_slice %arg8[%c1_i32_19] : memref<2x!tpu.dma_semaphore, #tpu.memory_space<semaphore_mem>> -> memref<1x!tpu.dma_semaphore, #tpu.memory_space<semaphore_mem>>
      %26 = tpu.memref_squeeze %25 : memref<1x!tpu.dma_semaphore, #tpu.memory_space<semaphore_mem>> -> memref<!tpu.dma_semaphore, #tpu.memory_space<semaphore_mem>>
      tpu.wait_dma2 semaphore(%26 : memref<!tpu.dma_semaphore, #tpu.memory_space<semaphore_mem>>) src(%23 : memref<1x128xf32, #tpu.memory_space<any>>) dst(%24 : memref<1x128xf32, #tpu.memory_space<vmem>>)
    }
    %c0 = arith.constant 0 : index
    %c0_5 = arith.constant 0 : index
    %3 = vector.load %arg6[%c0, %c0_5] : memref<128x128xf32, #tpu.memory_space<vmem>>, vector<128x128xf32>
    %c0_6 = arith.constant 0 : index
    %c0_7 = arith.constant 0 : index
    %4 = vector.load %arg7[%c0_6, %c0_7] : memref<128x128xf32, #tpu.memory_space<vmem>>, vector<128x128xf32>
    %5 = arith.mulf %3, %4 : vector<128x128xf32>
    %cst = arith.constant dense<0.000000e+00> : vector<128xf32>
    %6 = vector.multi_reduction <add>, %5, %cst [1] : vector<128x128xf32> to vector<128xf32>
    %7 = vector.shape_cast %6 : vector<128xf32> to vector<128x1xf32>
    %8 = arith.mulf %3, %3 : vector<128x128xf32>
    %cst_8 = arith.constant dense<0.000000e+00> : vector<128xf32>
    %9 = vector.multi_reduction <add>, %8, %cst_8 [1] : vector<128x128xf32> to vector<128xf32>
    %10 = vector.shape_cast %9 : vector<128xf32> to vector<128x1xf32>
    %11 = math.sqrt %10 : vector<128x1xf32>
    %12 = arith.mulf %4, %4 : vector<128x128xf32>
    %cst_9 = arith.constant dense<0.000000e+00> : vector<128xf32>
    %13 = vector.multi_reduction <add>, %12, %cst_9 [1] : vector<128x128xf32> to vector<128xf32>
    %14 = vector.shape_cast %13 : vector<128xf32> to vector<128x1xf32>
    %15 = math.sqrt %14 : vector<128x1xf32>
    %c0_10 = arith.constant 0 : index
    %c0_11 = arith.constant 0 : index
    %16 = vector.load %arg5[%c0_10, %c0_11] : memref<128x3xf32, #tpu.memory_space<vmem>>, vector<128x1xf32>
    tpu.vector_store %arg5[%c0_10, %c0_11], %7 {strides = array<i32>} : memref<128x3xf32, #tpu.memory_space<vmem>>, vector<128x1xf32>,
    %c0_12 = arith.constant 0 : index
    %c1 = arith.constant 1 : index
    %17 = vector.load %arg5[%c0_12, %c1] : memref<128x3xf32, #tpu.memory_space<vmem>>, vector<128x1xf32>
    tpu.vector_store %arg5[%c0_12, %c1], %11 {strides = array<i32>} : memref<128x3xf32, #tpu.memory_space<vmem>>, vector<128x1xf32>,
    %c0_13 = arith.constant 0 : index
    %c2 = arith.constant 2 : index
    %18 = vector.load %arg5[%c0_13, %c2] : memref<128x3xf32, #tpu.memory_space<vmem>>, vector<128x1xf32>
    tpu.vector_store %arg5[%c0_13, %c2], %15 {strides = array<i32>} : memref<128x3xf32, #tpu.memory_space<vmem>>, vector<128x1xf32>,
    return
  }
  func.func @transform_2(%arg0: i32, %arg1: memref<256xi32, #tpu.memory_space<smem>>, %arg2: memref<256xi32, #tpu.memory_space<smem>>) -> (i32, i32) {
    %c0_i32 = arith.constant 0 : i32
    %c0_i32_0 = arith.constant 0 : i32
    return %arg0, %c0_i32 : i32, i32
  }
}

</mosaic_0001>

<bundles_post_ra>
// kernel: p2vl_forward.1
= control target key start
LH: loop header
LB: loop body
LE: loop exit
PB: predicated region body
PF: predicated region fallthrough
CT: control target
= control target key end

     0   :  { %s1357_s0 = inlined_call_operand.vmem [shape: s32[256], index: 0, kind: input, shape index: {}]   ;;  %s1358_s2 = inlined_call_operand.hbm [shape: f32[512,128], index: 2, kind: input, shape index: {}]   ;;  %s1359_s3 = inlined_call_operand.hbm [shape: f32[512,128], index: 3, kind: input, shape index: {}]   ;;  %s1360_s4 = inlined_call_operand.vmem [shape: f32[256,3], index: 4, kind: output, shape index: {}]   ;;  %s1361_s1 = inlined_call_operand.vmem [shape: s32[256], index: 1, kind: input, shape index: {}]  }
   0x1   :  { %s9_s17 = sshll.u32 %s1357_s0, 4  ;;  %s13_s20 = sshll.u32 %s1361_s1, 4  ;;  %s10_s17 = int_to_ptr.vmem [resolvable:$true] %s9_s17  ;;  %s14_s20 = int_to_ptr.vmem [resolvable:$true] %s13_s20 }
   0x2   :  { %s737_s21 = scalar_lea.vmem %s10_s17, 32  ;;  %p742_p1 = scmp.lt.s32.totalorder %s10_s17, %s10_s17 }
   0x3   :  { %p738_p0 = scmp.ne.s32.totalorder %s10_s17, %s737_s21  ;;  %p743_p2 = scmp.lt.s32.totalorder %s737_s21, %s737_s21 }
   0x5   :  { %p744_p3 = por %p743_p2, %p742_p1 }
   0x7   :  { %p745_p4 = pnand %p744_p3, %p738_p0 }
   0x9   :  { %748 = shalt.err (!%p745_p4)  }
   0xa   :  { %s839_s22 = smov [#allocation6]   ;;  %s749_s23 = scalar_lea.vmem %s14_s20, 32 }
   0xb   :  { %12 = dma.vmem_to_smem %s10_s17, 32, %s839_s22, [#allocation5] }
   0xc   :  { %p750_p5 = scmp.ne.s32.totalorder %s14_s20, %s749_s23  ;;  %p754_p6 = scmp.lt.s32.totalorder %s14_s20, %s14_s20 }
   0xd   :  { %p755_p7 = scmp.lt.s32.totalorder %s749_s23, %s749_s23 }
   0xf   :  { %p756_p8 = por %p755_p7, %p754_p6 }
  0x11   :  { %p757_p9 = pnand %p756_p8, %p750_p5 }
  0x13   :  { %760 = shalt.err (!%p757_p9)  }
  0x14   :  { %s840_s0 = smov [#allocation7]  }
  0x15   :  { %16 = dma.vmem_to_smem %s14_s20, 32, %s840_s0, [#allocation5] }
  0x16   :  { %821 = dma.done.wait [#allocation5], 64 }
  0x17   :  { %822 = vsyncadd [#allocation5], 4294967232 }
  0x18   :  { %18 = sfence }
  0x19   :  { %s874_s1 = smov 0  }
  0x1a LB: > { %p637_p10 = scmp.ge.s32.totalorder %s829_s1, 2  ;;  %s829_s1 = sphi %s874_s1, %s24_s1  }
  0x1b   : > { %s638_s24 = sshll.u32 (!%p637_p10), %s829_s1, 4  ;;  %s640_s25 = sshll.u32 (!%p637_p10), %s829_s1, 7 }
  0x1c   : > { %49 = sbr.rel (%p637_p10) target bundleno = 347 (0x15b), region = 12  ;;  %p58_p11 = scmp.lt.s32.totalorder (!%p637_p10), %s638_s24, 31 }
  0x1d   : > { %s887_s30 = smov (!%p637_p10), 0  }
  0x23   : > { %s1363_s24 = smov (!%p58_p11, %s638_s24), 31 }
  0x24   : > { %s639_s26 = sshll.u32 %s1363_s24, 3 }
  0x25   : > { %s885_s29 = scalar_lea.vmem %s1360_s4, %s639_s26 }
  0x26 LB: >> { %s70_s5 = sadd.s32 %s833_s30, %s640_s25  ;;  %s75_s8 = scalar_lea.vmem [#allocation2], %s833_s30  ;;  %s833_s30 = sphi %s887_s30, %s69_s30  }
  0x27   : >> { %s71_s6 = sld [smem:[#allocation6 + %s70_s5]]  ;;  %s83_s9 = sshll.u32 %s75_s8, 4  ;;  %s84_s9 = int_to_ptr.vmem [resolvable:$true] %s83_s9 }
  0x28   : >> { %s895_s7 = sld [smem:[#allocation7 + %s70_s5]]  ;;  %s89_s10 = scalar_lea.vmem [#allocation3], %s833_s30 }
  0x29   : >> { %s98_s11 = sshll.u32 %s89_s10, 4  ;;  %s763_s20 = scalar_lea.hbm %s1358_s2, 8192  ;;  %s899_s11 = int_to_ptr.vmem [resolvable:$true] %s98_s11 }
  0x2d   : >> { %s641_s12 = sshll.u32 %s71_s6, 4 }
  0x2e   : >> { %s74_s15 = scalar_lea.hbm %s1358_s2, %s641_s12  ;;  %s642_s16 = sshll.u32 %s895_s7, 4 }
  0x2f   : >> { %s761_s17 = scalar_lea.hbm %s74_s15, 16  ;;  %p764_p13 = scmp.lt.u32.totalorder %s74_s15, %s1358_s2 }
  0x30   : >> { %p762_p12 = scmp.ne.s32.totalorder %s74_s15, %s761_s17  ;;  %p765_p0 = scmp.lt.u32.totalorder %s763_s20, %s761_s17 }
  0x31   : >> { %p767_p2 = scmp.lt.u32.totalorder %s761_s17, %s74_s15 }
  0x32   : >> { %p766_p1 = por %p765_p0, %p764_p13 }
  0x34   : >> { %p768_p3 = por %p767_p2, %p766_p1 }
  0x36   : >> { %p769_p4 = pnand %p768_p3, %p762_p12 }
  0x38   : >> { %772 = shalt.err (!%p769_p4)  }
  0x39   : >> { %s773_s23 = scalar_lea.vmem %s84_s9, 16  ;;  %s841_s0 = smov [#allocation2]  }
  0x3a   : >> { %p774_p5 = scmp.ne.s32.totalorder %s84_s9, %s773_s23  ;;  %s775_s24 = sshll.u32 %s841_s0, 4  ;;  %s776_s24 = int_to_ptr.vmem [resolvable:$false] %s775_s24 }
  0x3b   : >> { %s777_s26 = scalar_lea.vmem %s776_s24, 2048  ;;  %p778_p6 = scmp.lt.s32.totalorder %s84_s9, %s776_s24 }
  0x3c   : >> { %p779_p7 = scmp.lt.s32.totalorder %s777_s26, %s773_s23 }
  0x3e   : >> { %p780_p8 = por %p779_p7, %p778_p6 }
  0x40   : >> { %p781_p9 = pnand %p780_p8, %p774_p5 }
  0x42   : >> { %784 = shalt.err (!%p781_p9)  }
  0x43   : >> { %86 = dma.hbm_to_vmem [thread:$0]  %s74_s15, 16, %s84_s9, [#allocation4] }
  0x44   : >> { %s88_s5 = scalar_lea.hbm %s1359_s3, %s642_s16  ;;  %s787_s10 = scalar_lea.hbm %s1359_s3, 8192 }
  0x45   : >> { %s785_s6 = scalar_lea.hbm %s88_s5, 16  ;;  %p788_p11 = scmp.lt.u32.totalorder %s88_s5, %s1359_s3 }
  0x46   : >> { %p786_p10 = scmp.ne.s32.totalorder %s88_s5, %s785_s6  ;;  %p789_p12 = scmp.lt.u32.totalorder %s787_s10, %s785_s6 }
  0x47   : >> { %p791_p0 = scmp.lt.u32.totalorder %s785_s6, %s88_s5 }
  0x48   : >> { %p790_p13 = por %p789_p12, %p788_p11 }
  0x4a   : >> { %p792_p1 = por %p791_p0, %p790_p13 }
  0x4c   : >> { %p793_p2 = pnand %p792_p1, %p786_p10 }
  0x4e   : >> { %796 = shalt.err (!%p793_p2)  }
  0x4f   : >> { %s797_s9 = scalar_lea.vmem %s899_s11, 16  ;;  %s842_s14 = smov [#allocation3]  }
  0x50   : >> { %p798_p3 = scmp.ne.s32.totalorder %s899_s11, %s797_s9  ;;  %s799_s15 = sshll.u32 %s842_s14, 4  ;;  %s800_s15 = int_to_ptr.vmem [resolvable:$false] %s799_s15 }
  0x51   : >> { %s801_s16 = scalar_lea.vmem %s800_s15, 2048  ;;  %p802_p4 = scmp.lt.s32.totalorder %s899_s11, %s800_s15 }
  0x52   : >> { %p803_p5 = scmp.lt.s32.totalorder %s801_s16, %s797_s9 }
  0x54   : >> { %p804_p6 = por %p803_p5, %p802_p4 }
  0x56   : >> { %p805_p7 = pnand %p804_p6, %p798_p3 }
  0x58   : >> { %808 = shalt.err (!%p805_p7)  }
  0x59   : >> { %101 = dma.hbm_to_vmem [thread:$0]  %s88_s5, 16, %s899_s11, [#allocation4 + $0x1] }
  0x5a   : >> { %s69_s30 = sadd.s32 1, %s833_s30  }
  0x5b   : >> { %p66_p8 = scmp.ge.s32.totalorder %s69_s30, 128  }
  0x5c   : > { %s835_s17 = smov (%p66_p8), 0  }
  0x5d   : > { %68 = sbr.rel (!%p66_p8) target bundleno = 38 (0x26), region = 68 }
  0x64 LB: >> { %823 = dma.done.wait [#allocation4], 16  ;;  %s837_s17 = sphi %s835_s17, %s107_s17  }
  0x65   : >> { %824 = vsyncadd [#allocation4], 4294967280 }
  0x66   : >> { %825 = dma.done.wait [#allocation4 + $0x1], 16 }
  0x67   : >> { %826 = vsyncadd [#allocation4 + $0x1], 4294967280  ;;  %s107_s17 = sadd.s32 1, %s837_s17  }
  0x68   : >> { %p104_p9 = scmp.ge.s32.totalorder %s107_s17, 128  }
  0x69   : > { %v116_v0 = vld [vmem:[#allocation2 + $0x10] sm:$0xff] (%p104_p9)  ;;  %v114_v2 = vld [vmem:[#allocation2] sm:$0xff] (%p104_p9)  ;;  %v117_v5 = vld [vmem:[#allocation2 + $0x18] sm:$0xff] (%p104_p9)  ;;  %vm514_vm0 = vcmask (%p104_p9), 7168   ;;  %vm531_vm1 = vcmask (%p104_p9), 15368   ;;  %vm548_vm10 = vcmask (%p104_p9), 23568  }
  0x6a   : > { %106 = sbr.rel (!%p104_p9) target bundleno = 100 (0x64), region = 79  ;;  %v927_v1 = vld [vmem:[#allocation3 + $0x10] sm:$0xff] (%p104_p9)  ;;  %v130_v4 = vld [vmem:[#allocation3] sm:$0xff] (%p104_p9)  ;;  %v133_v6 = vld [vmem:[#allocation3 + $0x18] sm:$0xff] (%p104_p9)  ;;  %v194_v13 = vmul.f32 (%p104_p9), %v114_v2, %v114_v2  ;;  %v197_v14 = vmul.f32 (%p104_p9), %v117_v5, %v117_v5  ;;  %v196_v15 = vmul.f32 (%p104_p9), %v116_v0, %v116_v0 }
  0x6b   : > { %v148_v3 = vmul.f32 (%p104_p9), %v927_v1, %v116_v0  ;;  %v146_v7 = vmul.f32 (%p104_p9), %v130_v4, %v114_v2  ;;  %v115_v8 = vld [vmem:[#allocation2 + $0x8] sm:$0xff] (%p104_p9)  ;;  %v149_v10 = vmul.f32 (%p104_p9), %v133_v6, %v117_v5  ;;  %v932_v17 = vld [vmem:[#allocation2 + $0x20] sm:$0xff] (%p104_p9)  ;;  %v938_v20 = vld [vmem:[#allocation2 + $0x38] sm:$0xff] (%p104_p9)  ;;  %v354_v41 = vmul.f32 (%p104_p9), %v130_v4, %v130_v4 }
  0x6c   : > { %v131_v9 = vld [vmem:[#allocation3 + $0x8] sm:$0xff] (%p104_p9)  ;;  %v195_v12 = vmul.f32 (%p104_p9), %v115_v8, %v115_v8  ;;  %v198_v19 = vmul.f32 (%p104_p9), %v932_v17, %v932_v17  ;;  %v940_v21 = vld [vmem:[#allocation2 + $0x30] sm:$0xff] (%p104_p9)  ;;  %v201_v22 = vmul.f32 (%p104_p9), %v938_v20, %v938_v20  ;;  %v948_v25 = vld [vmem:[#allocation2 + $0x40] sm:$0xff] (%p104_p9)  ;;  %v357_v42 = vmul.f32 (%p104_p9), %v133_v6, %v133_v6 }
  0x6d   : > { %166 = vadd.xlane.f32.xlu1 (%p104_p9), %v148_v3  ;;  %162 = vadd.xlane.f32.xlu0 (%p104_p9), %v146_v7  ;;  %v147_v11 = vmul.f32 (%p104_p9), %v131_v9, %v115_v8  ;;  %v930_v16 = vld [vmem:[#allocation2 + $0x28] sm:$0xff] (%p104_p9)  ;;  %v200_v23 = vmul.f32 (%p104_p9), %v940_v21, %v940_v21  ;;  %v202_v27 = vmul.f32 (%p104_p9), %v948_v25, %v948_v25  ;;  %v954_v28 = vld [vmem:[#allocation2 + $0x58] sm:$0xff] (%p104_p9)  ;;  %v956_v29 = vld [vmem:[#allocation2 + $0x50] sm:$0xff] (%p104_p9) }
  0x6e   : > { %v199_v18 = vmul.f32 (%p104_p9), %v930_v16, %v930_v16  ;;  %v946_v24 = vld [vmem:[#allocation2 + $0x48] sm:$0xff] (%p104_p9)  ;;  %v205_v30 = vmul.f32 (%p104_p9), %v954_v28, %v954_v28  ;;  %v204_v31 = vmul.f32 (%p104_p9), %v956_v29, %v956_v29  ;;  %v964_v33 = vld [vmem:[#allocation2 + $0x60] sm:$0xff] (%p104_p9)  ;;  %v970_v36 = vld [vmem:[#allocation2 + $0x78] sm:$0xff] (%p104_p9)  ;;  %v355_v40 = vmul.f32 (%p104_p9), %v131_v9, %v131_v9 }
  0x6f   : > { %v203_v26 = vmul.f32 (%p104_p9), %v946_v24, %v946_v24  ;;  %v962_v32 = vld [vmem:[#allocation2 + $0x68] sm:$0xff] (%p104_p9)  ;;  %v206_v35 = vmul.f32 (%p104_p9), %v964_v33, %v964_v33  ;;  %v972_v37 = vld [vmem:[#allocation2 + $0x70] sm:$0xff] (%p104_p9)  ;;  %v209_v38 = vmul.f32 (%p104_p9), %v970_v36, %v970_v36  ;;  %v356_v43 = vmul.f32 (%p104_p9), %v927_v1, %v927_v1  ;;  %v134_v45 = vld [vmem:[#allocation3 + $0x20] sm:$0xff] (%p104_p9) }
  0x70   : > { %v207_v34 = vmul.f32 (%p104_p9), %v962_v32, %v962_v32  ;;  %v208_v39 = vmul.f32 (%p104_p9), %v972_v37, %v972_v37  ;;  %v135_v44 = vld [vmem:[#allocation3 + $0x28] sm:$0xff] (%p104_p9)  ;;  %v358_v47 = vmul.f32 (%p104_p9), %v134_v45, %v134_v45  ;;  %v137_v48 = vld [vmem:[#allocation3 + $0x38] sm:$0xff] (%p104_p9)  ;;  %v136_v49 = vld [vmem:[#allocation3 + $0x30] sm:$0xff] (%p104_p9)  ;;  %v150_v5 = vmul.f32 (%p104_p9), %v134_v45, %v932_v17 }
  0x71   : > { %168 = vadd.xlane.f32.xlu1 %v149_v10  ;;  %164 = vadd.xlane.f32.xlu0 %v147_v11  ;;  %v359_v46 = vmul.f32 %v135_v44, %v135_v44  ;;  %v361_v50 = vmul.f32 %v137_v48, %v137_v48  ;;  %v360_v51 = vmul.f32 %v136_v49, %v136_v49  ;;  %v139_v52 = vld [vmem:[#allocation3 + $0x48] sm:$0xff]  ;;  %v138_v53 = vld [vmem:[#allocation3 + $0x40] sm:$0xff]  ;;  %v141_v56 = vld [vmem:[#allocation3 + $0x58] sm:$0xff] }
  0x72   : > { %v363_v54 = vmul.f32 %v139_v52, %v139_v52  ;;  %v362_v55 = vmul.f32 %v138_v53, %v138_v53  ;;  %v140_v57 = vld [vmem:[#allocation3 + $0x50] sm:$0xff]  ;;  %v365_v58 = vmul.f32 %v141_v56, %v141_v56  ;;  %v143_v60 = vld [vmem:[#allocation3 + $0x68] sm:$0xff]  ;;  %v142_v61 = vld [vmem:[#allocation3 + $0x60] sm:$0xff]  ;;  %v151_v4 = vmul.f32 %v135_v44, %v930_v16 }
  0x73   : > { %v364_v59 = vmul.f32 %v140_v57, %v140_v57  ;;  %v367_v62 = vmul.f32 %v143_v60, %v143_v60  ;;  %v366_v63 = vmul.f32 %v142_v61, %v142_v61  ;;  %v145_v0 = vld [vmem:[#allocation3 + $0x78] sm:$0xff]  ;;  %v144_v1 = vld [vmem:[#allocation3 + $0x70] sm:$0xff]  ;;  %v153_v6 = vmul.f32 %v137_v48, %v938_v20 }
  0x74   : > { %v369_v2 = vmul.f32 %v145_v0, %v145_v0  ;;  %v368_v3 = vmul.f32 %v144_v1, %v144_v1  ;;  %v152_v7 = vmul.f32 %v136_v49, %v940_v21  ;;  %v155_v8 = vmul.f32 %v139_v52, %v946_v24 }
  0x75   : > { %212 = vadd.xlane.f32.xlu1 %v195_v12  ;;  %210 = vadd.xlane.f32.xlu0 %v194_v13  ;;  %v154_v9 = vmul.f32 %v138_v53, %v948_v25  ;;  %v157_v10 = vmul.f32 %v141_v56, %v954_v28  ;;  %v156_v11 = vmul.f32 %v140_v57, %v956_v29 }
  0x76   : > { %v159_v12 = vmul.f32 %v143_v60, %v962_v32  ;;  %v158_v13 = vmul.f32 %v142_v61, %v964_v33 }
  0x79   : > { %216 = vadd.xlane.f32.xlu1 %v197_v14  ;;  %214 = vadd.xlane.f32.xlu0 %v196_v15  ;;  %v161_v14 = vmul.f32 %v145_v0, %v970_v36  ;;  %v160_v15 = vmul.f32 %v144_v1, %v972_v37 }
  0x7d   : > { %220 = vadd.xlane.f32.xlu1 %v199_v18  ;;  %218 = vadd.xlane.f32.xlu0 %v198_v19 }
  0x81   : > { %224 = vadd.xlane.f32.xlu1 %v201_v22  ;;  %222 = vadd.xlane.f32.xlu0 %v200_v23 }
  0x85   : > { %228 = vadd.xlane.f32.xlu1 %v203_v26  ;;  %226 = vadd.xlane.f32.xlu0 %v202_v27 }
  0x89   : > { %232 = vadd.xlane.f32.xlu1 %v205_v30  ;;  %230 = vadd.xlane.f32.xlu0 %v204_v31 }
  0x8d   : > { %236 = vadd.xlane.f32.xlu1 %v207_v34  ;;  %234 = vadd.xlane.f32.xlu0 %v206_v35 }
  0x91   : > { %240 = vadd.xlane.f32.xlu1 %v209_v38  ;;  %238 = vadd.xlane.f32.xlu0 %v208_v39 }
  0x95   : > { %372 = vadd.xlane.f32.xlu1 %v355_v40  ;;  %370 = vadd.xlane.f32.xlu0 %v354_v41 }
  0x99   : > { %376 = vadd.xlane.f32.xlu1 %v357_v42  ;;  %374 = vadd.xlane.f32.xlu0 %v356_v43 }
  0x9d   : > { %380 = vadd.xlane.f32.xlu1 %v359_v46  ;;  %378 = vadd.xlane.f32.xlu0 %v358_v47 }
  0xa1   : > { %384 = vadd.xlane.f32.xlu1 %v361_v50  ;;  %382 = vadd.xlane.f32.xlu0 %v360_v51 }
  0xa5   : > { %388 = vadd.xlane.f32.xlu1 %v363_v54  ;;  %386 = vadd.xlane.f32.xlu0 %v362_v55 }
  0xa9   : > { %392 = vadd.xlane.f32.xlu1 %v365_v58  ;;  %390 = vadd.xlane.f32.xlu0 %v364_v59 }
  0xad   : > { %396 = vadd.xlane.f32.xlu1 %v367_v62  ;;  %394 = vadd.xlane.f32.xlu0 %v366_v63 }
  0xb1   : > { %400 = vadd.xlane.f32.xlu1 %v369_v2  ;;  %398 = vadd.xlane.f32.xlu0 %v368_v3 }
  0xb5   : > { %172 = vadd.xlane.f32.xlu1 %v151_v4  ;;  %170 = vadd.xlane.f32.xlu0 %v150_v5 }
  0xb9   : > { %176 = vadd.xlane.f32.xlu1 %v153_v6  ;;  %174 = vadd.xlane.f32.xlu0 %v152_v7 }
  0xbd   : > { %180 = vadd.xlane.f32.xlu1 %v155_v8  ;;  %178 = vadd.xlane.f32.xlu0 %v154_v9 }
  0xc1   : > { %184 = vadd.xlane.f32.xlu1 %v157_v10  ;;  %182 = vadd.xlane.f32.xlu0 %v156_v11 }
  0xc5   : > { %188 = vadd.xlane.f32.xlu1 %v159_v12  ;;  %186 = vadd.xlane.f32.xlu0 %v158_v13 }
  0xc9   : > { %192 = vadd.xlane.f32.xlu1 %v161_v14  ;;  %190 = vadd.xlane.f32.xlu0 %v160_v15 }
  0xfa   : > { %v167_v16 = vpop.xlane.xlu1 %166  ;;  %v163_v17 = vpop.xlane.xlu0 %162 }
  0xfb   : > { %517 = vst.msk [vmem:[%s885_s29 + $0x10] sm:$0xff] %vm514_vm0, %v167_v16  ;;  %515 = vst.msk [vmem:[%s885_s29] sm:$0xff] %vm514_vm0, %v163_v17 }
  0xfe   : > { %v169_v18 = vpop.xlane.xlu1 %168  ;;  %v165_v19 = vpop.xlane.xlu0 %164 }
  0xff   : > { %518 = vst.msk [vmem:[%s885_s29 + $0x18] sm:$0xff] %vm514_vm0, %v169_v18  ;;  %516 = vst.msk [vmem:[%s885_s29 + $0x8] sm:$0xff] %vm514_vm0, %v165_v19 }
 0x102   : > { %v213_v20 = vpop.xlane.xlu1 %212  ;;  %v211_v21 = vpop.xlane.xlu0 %210 }
 0x103   : > { %673 = vrsqrt.f32 %v213_v20  ;;  %vm251_vm2 = vcmp.eq.f32.partialorder %v213_v20, inf  ;;  %v254_v30 = vand.u32 2147483648, %v213_v20  ;;  %vm253_vm3 = vcmp.eq.f32.partialorder %v213_v20, 0.0 }
 0x104   : > { %675 = vrsqrt.f32 %v211_v21  ;;  %vm244_vm4 = vcmp.eq.f32.partialorder %v211_v21, inf  ;;  %v247_v34 = vand.u32 2147483648, %v211_v21  ;;  %vm246_vm5 = vcmp.eq.f32.partialorder %v211_v21, 0.0 }
 0x106   : > { %v217_v22 = vpop.xlane.xlu1 %216  ;;  %v215_v23 = vpop.xlane.xlu0 %214 }
 0x107   : > { %677 = vrsqrt.f32 %v217_v22  ;;  %vm265_vm6 = vcmp.eq.f32.partialorder %v217_v22, inf  ;;  %v268_v42 = vand.u32 2147483648, %v217_v22  ;;  %vm267_vm7 = vcmp.eq.f32.partialorder %v217_v22, 0.0 }
 0x108   : > { %679 = vrsqrt.f32 %v215_v23  ;;  %vm258_vm8 = vcmp.eq.f32.partialorder %v215_v23, inf  ;;  %v261_v46 = vand.u32 2147483648, %v215_v23  ;;  %vm260_vm9 = vcmp.eq.f32.partialorder %v215_v23, 0.0 }
 0x10a   : > { %v1000_v24 = vpop.xlane.xlu1 %220  ;;  %v1002_v25 = vpop.xlane.xlu0 %218 }
 0x10b   : > { %v282_v2 = vand.u32 2147483648, %v1000_v24  ;;  %vm279_vm13 = vcmp.eq.f32.partialorder %v1000_v24, inf  ;;  %v275_v17 = vand.u32 2147483648, %v1002_v25 }
 0x10d   : > { %v674_v26 = vpop.eup %673 }
 0x10e   : > { %v676_v27 = vpop.eup %675  ;;  %v250_v28 = vmul.f32 %v674_v26, %v213_v20  ;;  %v1004_v29 = vpop.xlane.xlu1 %224 }
 0x10f   : > { %v243_v31 = vmul.f32 %v676_v27, %v211_v21  ;;  %v1006_v32 = vpop.xlane.xlu0 %222 }
 0x110   : > { %v252_v33 = vsel %vm251_vm2, %v213_v20, %v250_v28  ;;  %vm272_vm2 = vcmp.eq.f32.partialorder %v1002_v25, inf }
 0x111   : > { %v678_v35 = vpop.eup %677  ;;  %v255_v36 = vsel %vm253_vm3, %v254_v30, %v252_v33  ;;  %v245_v37 = vsel %vm244_vm4, %v211_v21, %v243_v31  ;;  %vm281_vm3 = vcmp.eq.f32.partialorder %v1000_v24, 0.0 }
 0x112   : > { %v680_v38 = vpop.eup %679  ;;  %533 = vst.msk [vmem:[%s885_s29 + $0x8] sm:$0xff] %vm531_vm1, %v255_v36  ;;  %v248_v39 = vsel %vm246_vm5, %v247_v34, %v245_v37  ;;  %v264_v40 = vmul.f32 %v678_v35, %v217_v22  ;;  %v1010_v41 = vpop.xlane.xlu1 %228  ;;  %v296_v36 = vand.u32 2147483648, %v1004_v29 }
 0x113   : > { %532 = vst.msk [vmem:[%s885_s29] sm:$0xff] %vm531_vm1, %v248_v39  ;;  %v257_v43 = vmul.f32 %v680_v38, %v215_v23  ;;  %v1014_v44 = vpop.xlane.xlu0 %226  ;;  %v289_v38 = vand.u32 2147483648, %v1006_v32 }
 0x114   : > { %v266_v45 = vsel %vm265_vm6, %v217_v22, %v264_v40  ;;  %vm293_vm6 = vcmp.eq.f32.partialorder %v1004_v29, inf }
 0x115   : > { %v269_v47 = vsel %vm267_vm7, %v268_v42, %v266_v45  ;;  %v259_v48 = vsel %vm258_vm8, %v215_v23, %v257_v43  ;;  %vm274_vm8 = vcmp.eq.f32.partialorder %v1002_v25, 0.0 }
 0x116   : > { %535 = vst.msk [vmem:[%s885_s29 + $0x18] sm:$0xff] %vm531_vm1, %v269_v47  ;;  %v262_v49 = vsel %vm260_vm9, %v261_v46, %v259_v48  ;;  %v1018_v50 = vpop.xlane.xlu1 %232 }
 0x117   : > { %534 = vst.msk [vmem:[%s885_s29 + $0x10] sm:$0xff] %vm531_vm1, %v262_v49  ;;  %v1022_v51 = vpop.xlane.xlu0 %230  ;;  %v310_v49 = vand.u32 2147483648, %v1010_v41 }
 0x11a   : > { %v1024_v52 = vpop.xlane.xlu1 %236 }
 0x11b   : > { %v1026_v53 = vpop.xlane.xlu0 %234 }
 0x11e   : > { %v1028_v54 = vpop.xlane.xlu1 %240 }
 0x11f   : > { %v1030_v55 = vpop.xlane.xlu0 %238 }
 0x122   : > { %v373_v56 = vpop.xlane.xlu1 %372 }
 0x123   : > { %681 = vrsqrt.f32 %v373_v56  ;;  %v371_v57 = vpop.xlane.xlu0 %370  ;;  %vm411_vm11 = vcmp.eq.f32.partialorder %v373_v56, inf  ;;  %vm413_vm12 = vcmp.eq.f32.partialorder %v373_v56, 0.0  ;;  %v414_v4 = vand.u32 2147483648, %v373_v56 }
 0x124   : > { %683 = vrsqrt.f32 %v371_v57  ;;  %vm404_vm14 = vcmp.eq.f32.partialorder %v371_v57, inf  ;;  %v407_v8 = vand.u32 2147483648, %v371_v57  ;;  %vm406_vm15 = vcmp.eq.f32.partialorder %v371_v57, 0.0 }
 0x125   : > { %685 = vrsqrt.f32 %v1000_v24 }
 0x126   : > { %v377_v58 = vpop.xlane.xlu1 %376 }
 0x127   : > { %687 = vrsqrt.f32 %v377_v58  ;;  %v1033_v59 = vpop.xlane.xlu0 %374  ;;  %vm425_vm4 = vcmp.eq.f32.partialorder %v377_v58, inf  ;;  %vm427_vm5 = vcmp.eq.f32.partialorder %v377_v58, 0.0  ;;  %v428_v19 = vand.u32 2147483648, %v377_v58 }
 0x128   : > { %689 = vrsqrt.f32 %v1033_v59  ;;  %vm418_vm7 = vcmp.eq.f32.partialorder %v1033_v59, inf  ;;  %v421_v26 = vand.u32 2147483648, %v1033_v59  ;;  %vm420_vm9 = vcmp.eq.f32.partialorder %v1033_v59, 0.0 }
 0x129   : > { %691 = vrsqrt.f32 %v1002_v25 }
 0x12a   : > { %693 = vrsqrt.f32 %v1004_v29  ;;  %v1038_v60 = vpop.xlane.xlu1 %380 }
 0x12b   : > { %695 = vrsqrt.f32 %v1006_v32  ;;  %v1041_v61 = vpop.xlane.xlu0 %378 }
 0x12c   : > { %697 = vrsqrt.f32 %v1010_v41 }
 0x12d   : > { %v682_v62 = vpop.eup %681  ;;  %699 = vrsqrt.f32 %v1014_v44 }
 0x12e   : > { %v684_v63 = vpop.eup %683  ;;  %v410_v0 = vmul.f32 %v682_v62, %v373_v56  ;;  %v1045_v1 = vpop.xlane.xlu1 %384  ;;  %701 = vrsqrt.f32 %v1038_v60  ;;  %v324_v62 = vand.u32 2147483648, %v1018_v50 }
 0x12f   : > { %v686_v3 = vpop.eup %685  ;;  %v403_v5 = vmul.f32 %v684_v63, %v371_v57  ;;  %v1048_v6 = vpop.xlane.xlu0 %382  ;;  %703 = vrsqrt.f32 %v1041_v61 }
 0x130   : > { %v412_v7 = vsel %vm411_vm11, %v373_v56, %v410_v0  ;;  %v278_v16 = vmul.f32 %v686_v3, %v1000_v24  ;;  %705 = vrsqrt.f32 %v1045_v1  ;;  %vm295_vm11 = vcmp.eq.f32.partialorder %v1004_v29, 0.0 }
 0x131   : > { %v688_v9 = vpop.eup %687  ;;  %v415_v10 = vsel %vm413_vm12, %v414_v4, %v412_v7  ;;  %v405_v11 = vsel %vm404_vm14, %v371_v57, %v403_v5  ;;  %707 = vrsqrt.f32 %v1048_v6  ;;  %vm286_vm12 = vcmp.eq.f32.partialorder %v1006_v32, inf }
 0x132   : > { %v690_v12 = vpop.eup %689  ;;  %550 = vst.msk [vmem:[%s885_s29 + $0x8] sm:$0xff] %vm548_vm10, %v415_v10  ;;  %v408_v13 = vsel %vm406_vm15, %v407_v8, %v405_v11  ;;  %v424_v14 = vmul.f32 %v688_v9, %v377_v58  ;;  %v1056_v15 = vpop.xlane.xlu1 %388  ;;  %709 = vrsqrt.f32 %v1018_v50  ;;  %vm288_vm14 = vcmp.eq.f32.partialorder %v1006_v32, 0.0 }
 0x133   : > { %v692_v18 = vpop.eup %691  ;;  %549 = vst.msk [vmem:[%s885_s29] sm:$0xff] %vm548_vm10, %v408_v13  ;;  %v417_v20 = vmul.f32 %v690_v12, %v1033_v59  ;;  %v1064_v21 = vpop.xlane.xlu0 %386  ;;  %711 = vrsqrt.f32 %v1022_v51  ;;  %v280_v40 = vsel %vm279_vm13, %v1000_v24, %v278_v16  ;;  %vm307_vm15 = vcmp.eq.f32.partialorder %v1010_v41, inf }
 0x134   : > { %v694_v22 = vpop.eup %693  ;;  %v426_v23 = vsel %vm425_vm4, %v377_v58, %v424_v14  ;;  %v271_v35 = vmul.f32 %v692_v18, %v1002_v25  ;;  %713 = vrsqrt.f32 %v1056_v15  ;;  %vm309_vm4 = vcmp.eq.f32.partialorder %v1010_v41, 0.0 }
 0x135   : > { %v696_v27 = vpop.eup %695  ;;  %v429_v28 = vsel %vm427_vm5, %v428_v19, %v426_v23  ;;  %v419_v30 = vsel %vm418_vm7, %v1033_v59, %v417_v20  ;;  %v292_v42 = vmul.f32 %v694_v22, %v1004_v29  ;;  %715 = vrsqrt.f32 %v1064_v21 }
 0x136   : > { %v698_v31 = vpop.eup %697  ;;  %552 = vst.msk [vmem:[%s885_s29 + $0x18] sm:$0xff] %vm548_vm10, %v429_v28  ;;  %v422_v33 = vsel %vm420_vm9, %v421_v26, %v419_v30  ;;  %v1077_v34 = vpop.xlane.xlu1 %392  ;;  %v285_v43 = vmul.f32 %v696_v27, %v1006_v32  ;;  %717 = vrsqrt.f32 %v1024_v52  ;;  %v273_v48 = vsel %vm272_vm2, %v1002_v25, %v271_v35 }
 0x137   : > { %551 = vst.msk [vmem:[%s885_s29 + $0x10] sm:$0xff] %vm548_vm10, %v422_v33  ;;  %v1085_v37 = vpop.xlane.xlu0 %390  ;;  %v700_v39 = vpop.eup %699  ;;  %v306_v45 = vmul.f32 %v698_v31, %v1010_v41  ;;  %vm300_vm13 = vcmp.eq.f32.partialorder %v1014_v44, inf  ;;  %719 = vrsqrt.f32 %v1026_v53  ;;  %v283_v58 = vsel %vm281_vm3, %v282_v2, %v280_v40 }
 0x138   : > { %v702_v46 = vpop.eup %701  ;;  %v303_v59 = vand.u32 2147483648, %v1014_v44  ;;  %721 = vrsqrt.f32 %v1077_v34  ;;  %v294_v63 = vsel %vm293_vm6, %v1004_v29, %v292_v42  ;;  %v287_v0 = vsel %vm286_vm12, %v1006_v32, %v285_v43 }
 0x139   : > { %v704_v56 = vpop.eup %703  ;;  %v317_v3 = vand.u32 2147483648, %v1022_v51  ;;  %v438_v4 = vmul.f32 %v702_v46, %v1038_v60  ;;  %723 = vrsqrt.f32 %v1085_v37  ;;  %v276_v24 = vsel %vm274_vm8, %v275_v17, %v273_v48 }
 0x13a   : > { %v1101_v47 = vpop.xlane.xlu1 %396  ;;  %v308_v2 = vsel %vm307_vm15, %v1010_v41, %v306_v45  ;;  %vm302_vm2 = vcmp.eq.f32.partialorder %v1014_v44, 0.0  ;;  %v706_v5 = vpop.eup %705  ;;  %725 = vrsqrt.f32 %v1028_v54  ;;  %v431_v7 = vmul.f32 %v704_v56, %v1041_v61 }
 0x13b   : > { %v1109_v57 = vpop.xlane.xlu0 %394  ;;  %v299_v9 = vmul.f32 %v700_v39, %v1014_v44  ;;  %vm321_vm3 = vcmp.eq.f32.partialorder %v1018_v50, inf  ;;  %v338_v25 = vand.u32 2147483648, %v1024_v52  ;;  %v708_v10 = vpop.eup %707  ;;  %727 = vrsqrt.f32 %v1030_v55 }
 0x13c   : > { %v297_v12 = vsel %vm295_vm11, %v296_v36, %v294_v63  ;;  %v1147_v13 = vsel %vm288_vm14, %v289_v38, %v287_v0  ;;  %v331_v14 = vand.u32 2147483648, %v1026_v53  ;;  %v710_v16 = vpop.eup %709  ;;  %729 = vrsqrt.f32 %v1101_v47 }
 0x13d   : > { %vm439_vm5 = vcmp.eq.f32.partialorder %v1038_v60, inf  ;;  %v1154_v17 = vsel %vm309_vm4, %v310_v49, %v308_v2  ;;  %v352_v18 = vand.u32 2147483648, %v1028_v54  ;;  %v712_v29 = vpop.eup %711  ;;  %v452_v19 = vmul.f32 %v706_v5, %v1045_v1 }
 0x13e   : > { %v1135_v8 = vpop.xlane.xlu1 %400  ;;  %731 = vrsqrt.f32 %v1109_v57  ;;  %v440_v32 = vsel %vm439_vm5, %v1038_v60, %v438_v4  ;;  %vm432_vm6 = vcmp.eq.f32.partialorder %v1041_v61, inf  ;;  %vm323_vm7 = vcmp.eq.f32.partialorder %v1018_v50, 0.0  ;;  %v714_v20 = vpop.eup %713 }
 0x13f   : > { %v1141_v11 = vpop.xlane.xlu0 %398  ;;  %v445_v22 = vmul.f32 %v708_v10, %v1048_v6  ;;  %v442_v41 = vand.u32 2147483648, %v1038_v60  ;;  %v433_v26 = vsel %vm432_vm6, %v1041_v61, %v431_v7  ;;  %v301_v27 = vsel %vm300_vm13, %v1014_v44, %v299_v9  ;;  %v716_v28 = vpop.eup %715 }
 0x140   : > { %vm314_vm8 = vcmp.eq.f32.partialorder %v1022_v51, inf  ;;  %vm441_vm9 = vcmp.eq.f32.partialorder %v1038_v60, 0.0  ;;  %vm434_vm11 = vcmp.eq.f32.partialorder %v1041_v61, 0.0  ;;  %v435_v30 = vand.u32 2147483648, %v1041_v61  ;;  %v718_v35 = vpop.eup %717 }
 0x141   : > { %v320_v33 = vmul.f32 %v710_v16, %v1018_v50  ;;  %vm335_vm12 = vcmp.eq.f32.partialorder %v1024_v52, inf  ;;  %733 = vrsqrt.f32 %v1135_v8  ;;  %v443_v36 = vsel %vm441_vm9, %v442_v41, %v440_v32  ;;  %v720_v60 = vpop.eup %719 }
 0x142   : > { %v173_v23 = vpop.xlane.xlu1 %172  ;;  %vm453_vm14 = vcmp.eq.f32.partialorder %v1045_v1, inf  ;;  %vm446_vm15 = vcmp.eq.f32.partialorder %v1048_v6, inf  ;;  %v466_v38 = vmul.f32 %v714_v20, %v1056_v15  ;;  %735 = vrsqrt.f32 %v1141_v11  ;;  %v722_v42 = vpop.eup %721 }
 0x143   : > { %520 = vst.msk [vmem:[%s885_s29 + $0x28] sm:$0xff] %vm514_vm0, %v173_v23  ;;  %v171_v31 = vpop.xlane.xlu0 %170  ;;  %v436_v39 = vsel %vm434_vm11, %v435_v30, %v433_v26  ;;  %v454_v40 = vsel %vm453_vm14, %v1045_v1, %v452_v19  ;;  %vm316_vm4 = vcmp.eq.f32.partialorder %v1022_v51, 0.0  ;;  %v459_v43 = vmul.f32 %v716_v28, %v1064_v21  ;;  %v724_v49 = vpop.eup %723 }
 0x144   : > { %537 = vst.msk [vmem:[%s885_s29 + $0x28] sm:$0xff] %vm531_vm1, %v283_v58  ;;  %v456_v45 = vand.u32 2147483648, %v1045_v1  ;;  %v447_v48 = vsel %vm446_vm15, %v1048_v6, %v445_v22  ;;  %v304_v61 = vsel %vm302_vm2, %v303_v59, %v301_v27  ;;  %vm328_vm13 = vcmp.eq.f32.partialorder %v1026_v53, inf  ;;  %v726_v44 = vpop.eup %725 }
 0x145   : > { %519 = vst.msk [vmem:[%s885_s29 + $0x20] sm:$0xff] %vm514_vm0, %v171_v31  ;;  %vm455_vm5 = vcmp.eq.f32.partialorder %v1045_v1, 0.0  ;;  %v449_v56 = vand.u32 2147483648, %v1048_v6  ;;  %v322_v63 = vsel %vm321_vm3, %v1018_v50, %v320_v33  ;;  %v313_v0 = vmul.f32 %v712_v29, %v1022_v51  ;;  %v728_v4 = vpop.eup %727 }
 0x146   : > { %554 = vst.msk [vmem:[%s885_s29 + $0x28] sm:$0xff] %vm548_vm10, %v443_v36  ;;  %v177_v46 = vpop.xlane.xlu1 %176  ;;  %v457_v59 = vsel %vm455_vm5, %v456_v45, %v454_v40  ;;  %vm448_vm2 = vcmp.eq.f32.partialorder %v1048_v6, 0.0  ;;  %vm467_vm6 = vcmp.eq.f32.partialorder %v1056_v15, inf  ;;  %v334_v1 = vmul.f32 %v718_v35, %v1024_v52  ;;  %v730_v6 = vpop.eup %729 }
 0x147   : > { %536 = vst.msk [vmem:[%s885_s29 + $0x20] sm:$0xff] %vm531_vm1, %v276_v24  ;;  %v175_v58 = vpop.xlane.xlu0 %174  ;;  %v480_v24 = vmul.f32 %v722_v42, %v1077_v34  ;;  %v450_v2 = vsel %vm448_vm2, %v449_v56, %v447_v48  ;;  %v468_v5 = vsel %vm467_vm6, %v1056_v15, %v466_v38  ;;  %vm460_vm3 = vcmp.eq.f32.partialorder %v1064_v21, inf }
 0x148   : > { %553 = vst.msk [vmem:[%s885_s29 + $0x20] sm:$0xff] %vm548_vm10, %v436_v39  ;;  %v473_v7 = vmul.f32 %v724_v49, %v1085_v37  ;;  %v470_v9 = vand.u32 2147483648, %v1056_v15  ;;  %vm337_vm9 = vcmp.eq.f32.partialorder %v1024_v52, 0.0  ;;  %vm349_vm11 = vcmp.eq.f32.partialorder %v1028_v54, inf  ;;  %v732_v16 = vpop.eup %731 }
 0x149   : > { %522 = vst.msk [vmem:[%s885_s29 + $0x38] sm:$0xff] %vm514_vm0, %v177_v46  ;;  %521 = vst.msk [vmem:[%s885_s29 + $0x30] sm:$0xff] %vm514_vm0, %v175_v58  ;;  %vm469_vm14 = vcmp.eq.f32.partialorder %v1056_v15, 0.0  ;;  %v463_v29 = vand.u32 2147483648, %v1064_v21  ;;  %v315_v32 = vsel %vm314_vm8, %v1022_v51, %v313_v0  ;;  %v327_v50 = vmul.f32 %v720_v60, %v1026_v53 }
 0x14a   : > { %539 = vst.msk [vmem:[%s885_s29 + $0x38] sm:$0xff] %vm531_vm1, %v297_v12  ;;  %538 = vst.msk [vmem:[%s885_s29 + $0x30] sm:$0xff] %vm531_vm1, %v1147_v13  ;;  %v181_v10 = vpop.xlane.xlu1 %180  ;;  %v461_v12 = vsel %vm460_vm3, %v1064_v21, %v459_v43  ;;  %v325_v13 = vsel %vm323_vm7, %v324_v62, %v322_v63  ;;  %vm330_vm7 = vcmp.eq.f32.partialorder %v1026_v53, 0.0  ;;  %v471_v62 = vsel %vm469_vm14, %v470_v9, %v468_v5 }
 0x14b   : > { %556 = vst.msk [vmem:[%s885_s29 + $0x38] sm:$0xff] %vm548_vm10, %v457_v59  ;;  %555 = vst.msk [vmem:[%s885_s29 + $0x30] sm:$0xff] %vm548_vm10, %v450_v2  ;;  %v179_v19 = vpop.xlane.xlu0 %178  ;;  %vm462_vm15 = vcmp.eq.f32.partialorder %v1064_v21, 0.0  ;;  %vm481_vm5 = vcmp.eq.f32.partialorder %v1077_v34, inf  ;;  %v336_v15 = vsel %vm335_vm12, %v1024_v52, %v334_v1  ;;  %v494_v20 = vmul.f32 %v730_v6, %v1101_v47  ;;  %v734_v21 = vpop.eup %733 }
 0x14c   : > { %524 = vst.msk [vmem:[%s885_s29 + $0x48] sm:$0xff] %vm514_vm0, %v181_v10  ;;  %523 = vst.msk [vmem:[%s885_s29 + $0x40] sm:$0xff] %vm514_vm0, %v179_v19  ;;  %v464_v22 = vsel %vm462_vm15, %v463_v29, %v461_v12  ;;  %vm474_vm8 = vcmp.eq.f32.partialorder %v1085_v37, inf  ;;  %v487_v41 = vmul.f32 %v732_v16, %v1109_v57  ;;  %v484_v23 = vand.u32 2147483648, %v1077_v34  ;;  %v736_v30 = vpop.eup %735 }
 0x14d   : > { %541 = vst.msk [vmem:[%s885_s29 + $0x48] sm:$0xff] %vm531_vm1, %v1154_v17  ;;  %540 = vst.msk [vmem:[%s885_s29 + $0x40] sm:$0xff] %vm531_vm1, %v304_v61  ;;  %v482_v17 = vsel %vm481_vm5, %v1077_v34, %v480_v24  ;;  %v318_v27 = vsel %vm316_vm4, %v317_v3, %v315_v32  ;;  %v475_v28 = vsel %vm474_vm8, %v1085_v37, %v473_v7  ;;  %vm483_vm12 = vcmp.eq.f32.partialorder %v1077_v34, 0.0 }
 0x14e   : > { %558 = vst.msk [vmem:[%s885_s29 + $0x48] sm:$0xff] %vm548_vm10, %v471_v62  ;;  %557 = vst.msk [vmem:[%s885_s29 + $0x40] sm:$0xff] %vm548_vm10, %v464_v22  ;;  %v185_v26 = vpop.xlane.xlu1 %184  ;;  %v477_v31 = vand.u32 2147483648, %v1085_v37  ;;  %v329_v35 = vsel %vm328_vm13, %v1026_v53, %v327_v50  ;;  %v348_v51 = vmul.f32 %v726_v44, %v1028_v54  ;;  %v485_v3 = vsel %vm483_vm12, %v484_v23, %v482_v17 }
 0x14f   : > { %526 = vst.msk [vmem:[%s885_s29 + $0x58] sm:$0xff] %vm514_vm0, %v185_v26  ;;  %v183_v33 = vpop.xlane.xlu0 %182  ;;  %vm476_vm4 = vcmp.eq.f32.partialorder %v1085_v37, 0.0  ;;  %vm495_vm2 = vcmp.eq.f32.partialorder %v1101_v47, inf  ;;  %v341_v34 = vmul.f32 %v728_v4, %v1030_v55  ;;  %v508_v36 = vmul.f32 %v734_v21, %v1135_v8 }
 0x150   : > { %543 = vst.msk [vmem:[%s885_s29 + $0x58] sm:$0xff] %vm531_vm1, %v325_v13  ;;  %v478_v60 = vsel %vm476_vm4, %v477_v31, %v475_v28  ;;  %v496_v38 = vsel %vm495_vm2, %v1101_v47, %v494_v20  ;;  %vm488_vm13 = vcmp.eq.f32.partialorder %v1109_v57, inf  ;;  %v501_v37 = vmul.f32 %v736_v30, %v1141_v11 }
 0x151   : > { %525 = vst.msk [vmem:[%s885_s29 + $0x50] sm:$0xff] %vm514_vm0, %v183_v33  ;;  %v498_v39 = vand.u32 2147483648, %v1101_v47  ;;  %v489_v42 = vsel %vm488_vm13, %v1109_v57, %v487_v41  ;;  %vm342_vm6 = vcmp.eq.f32.partialorder %v1030_v55, inf  ;;  %v339_v43 = vsel %vm337_vm9, %v338_v25, %v336_v15 }
 0x152   : > { %560 = vst.msk [vmem:[%s885_s29 + $0x58] sm:$0xff] %vm548_vm10, %v485_v3  ;;  %v189_v40 = vpop.xlane.xlu1 %188  ;;  %vm497_vm3 = vcmp.eq.f32.partialorder %v1101_v47, 0.0  ;;  %v491_v45 = vand.u32 2147483648, %v1109_v57  ;;  %v350_v48 = vsel %vm349_vm11, %v1028_v54, %v348_v51  ;;  %v332_v52 = vsel %vm330_vm7, %v331_v14, %v329_v35 }
 0x153   : > { %542 = vst.msk [vmem:[%s885_s29 + $0x50] sm:$0xff] %vm531_vm1, %v318_v27  ;;  %v187_v46 = vpop.xlane.xlu0 %186  ;;  %v499_v61 = vsel %vm497_vm3, %v498_v39, %v496_v38  ;;  %vm490_vm9 = vcmp.eq.f32.partialorder %v1109_v57, 0.0  ;;  %vm509_vm14 = vcmp.eq.f32.partialorder %v1135_v8, inf  ;;  %v343_v53 = vsel %vm342_vm6, %v1030_v55, %v341_v34 }
 0x154   : > { %559 = vst.msk [vmem:[%s885_s29 + $0x50] sm:$0xff] %vm548_vm10, %v478_v60  ;;  %v492_v47 = vsel %vm490_vm9, %v491_v45, %v489_v42  ;;  %v510_v25 = vsel %vm509_vm14, %v1135_v8, %v508_v36  ;;  %vm502_vm11 = vcmp.eq.f32.partialorder %v1141_v11, inf  ;;  %vm351_vm7 = vcmp.eq.f32.partialorder %v1028_v54, 0.0 }
 0x155   : > { %528 = vst.msk [vmem:[%s885_s29 + $0x68] sm:$0xff] %vm514_vm0, %v189_v40  ;;  %527 = vst.msk [vmem:[%s885_s29 + $0x60] sm:$0xff] %vm514_vm0, %v187_v46  ;;  %v512_v57 = vand.u32 2147483648, %v1135_v8  ;;  %v345_v49 = vand.u32 2147483648, %v1030_v55  ;;  %v503_v56 = vsel %vm502_vm11, %v1141_v11, %v501_v37  ;;  %v353_v58 = vsel %vm351_vm7, %v352_v18, %v350_v48 }
 0x156   : > { %545 = vst.msk [vmem:[%s885_s29 + $0x68] sm:$0xff] %vm531_vm1, %v339_v43  ;;  %544 = vst.msk [vmem:[%s885_s29 + $0x60] sm:$0xff] %vm531_vm1, %v332_v52  ;;  %v193_v14 = vpop.xlane.xlu1 %192  ;;  %vm511_vm15 = vcmp.eq.f32.partialorder %v1135_v8, 0.0  ;;  %vm344_vm5 = vcmp.eq.f32.partialorder %v1030_v55, 0.0  ;;  %v505_v63 = vand.u32 2147483648, %v1141_v11  ;;  %vm504_vm8 = vcmp.eq.f32.partialorder %v1141_v11, 0.0 }
 0x157   : > { %562 = vst.msk [vmem:[%s885_s29 + $0x68] sm:$0xff] %vm548_vm10, %v499_v61  ;;  %561 = vst.msk [vmem:[%s885_s29 + $0x60] sm:$0xff] %vm548_vm10, %v492_v47  ;;  %v191_v0 = vpop.xlane.xlu0 %190  ;;  %v513_v44 = vsel %vm511_vm15, %v512_v57, %v510_v25  ;;  %v346_v59 = vsel %vm344_vm5, %v345_v49, %v343_v53 }
 0x158   : > { %530 = vst.msk [vmem:[%s885_s29 + $0x78] sm:$0xff] %vm514_vm0, %v193_v14  ;;  %529 = vst.msk [vmem:[%s885_s29 + $0x70] sm:$0xff] %vm514_vm0, %v191_v0  ;;  %v506_v54 = vsel %vm504_vm8, %v505_v63, %v503_v56 }
 0x159   : > { %547 = vst.msk [vmem:[%s885_s29 + $0x78] sm:$0xff] %vm531_vm1, %v353_v58  ;;  %546 = vst.msk [vmem:[%s885_s29 + $0x70] sm:$0xff] %vm531_vm1, %v346_v59 }
 0x15a   : > { %564 = vst.msk [vmem:[%s885_s29 + $0x78] sm:$0xff] %vm548_vm10, %v513_v44  ;;  %563 = vst.msk [vmem:[%s885_s29 + $0x70] sm:$0xff] %vm548_vm10, %v506_v54 }
 0x15b PF: > { %s24_s1 = sadd.s32 1, %s829_s1  }
 0x15c   : > { %p21_p10 = scmp.ge.s32.totalorder %s24_s1, 3  }
 0x15e   :  { %23 = sbr.rel (!%p21_p10) target bundleno = 26 (0x1a), region = 90 }
 0x165   :  { %587 = vsyncmov [#allocation4] }
 0x168   :  { %s588_s25 = vpop.sfrf %587 }
 0x169   :  { %p645_p11 = scmp.ne.s32.totalorder %s588_s25, 0 }
 0x16b   :  { %592 = shalt.err (%p645_p11)  }
 0x16c   :  { %594 = vsyncmov [#allocation4 + $0x1] }
 0x16f   :  { %s595_s30 = vpop.sfrf %594 }
 0x170   :  { %p646_p12 = scmp.ne.s32.totalorder %s595_s30, 0 }
 0x172   :  { %599 = shalt.err (%p646_p12)  }

</bundles_post_ra>
